<compile_context>
chip_gen: v5e
topology: v5e:2x2
jax: 0.10.0
libtpu: 0.0.40
codegen_flags: <defaults>
</compile_context>

<pallas_src>
import functools

import jax
import jax.numpy as jnp
from jax.experimental import pallas as pl
from jax.experimental.pallas import tpu as pltpu


def _round_up(x, m):
    return (x + m - 1) // m * m


def _hardswish(x):
    # PyTorch Hardswish: x * relu6(x + 3) / 6
    return x * jnp.clip(x + 3.0, 0.0, 6.0) * (1.0 / 6.0)


# ---------------------------------------------------------------------------
# Kernel
# ---------------------------------------------------------------------------
def densenet_kernel(x_ref, w1_ref, b1_ref, w2a_ref, w2b_ref, b2_ref, out_ref):
    d0 = x_ref.shape[1]
    h1_dim = w1_ref.shape[1]

    x1 = x_ref[...]                              # (TB, d0) f32 — exact passthrough
    x1_op = x1.astype(w1_ref.dtype)              # MXU operand dtype (bf16 or f32)

    # dense1: Linear + Hardswish (f32 MXU accumulation)
    h1 = jnp.dot(x1_op, w1_ref[...], preferred_element_type=jnp.float32)
    h1 = _hardswish(h1 + b1_ref[...])            # (TB, h1_dim) f32

    # dense2 on the *implicit* concat([x1, h1]) via split-weight accumulation:
    # two MXU pushes into one f32 result, no lane-axis concat / x2 temporary.
    h2 = jnp.dot(x1_op, w2a_ref[...], preferred_element_type=jnp.float32)
    h2 = h2 + jnp.dot(h1.astype(w2b_ref.dtype), w2b_ref[...],
                      preferred_element_type=jnp.float32)
    h2 = _hardswish(h2 + b2_ref[...])            # (TB, h2_pad) f32

    if d0 % 128 == 0 and (d0 + h1_dim) % 128 == 0:
        # Segment boundaries are lane-aligned: unmasked slice stores.
        out_ref[:, :d0] = x1.astype(out_ref.dtype)
        out_ref[:, d0:d0 + h1_dim] = h1.astype(out_ref.dtype)
        out_ref[:, d0 + h1_dim:] = h2.astype(out_ref.dtype)
    else:
        # Small / unaligned dims: assemble the lane-dense tile in registers and
        # issue a single full-width unmasked store (avoids masked RMW stores).
        tile = jnp.concatenate(
            [x1.astype(out_ref.dtype),
             h1.astype(out_ref.dtype),
             h2.astype(out_ref.dtype)], axis=1)
        out_ref[...] = tile


# ---------------------------------------------------------------------------
# Capability probes / hardware budget
# ---------------------------------------------------------------------------
@functools.lru_cache(maxsize=None)
def _single_buffer_weights_supported():
    """Probe (once, end-to-end) whether pipeline_mode=pl.Buffered(1) works."""
    try:
        def _k(a_ref, b_ref, o_ref):
            o_ref[...] = a_ref[...] + b_ref[...]

        f = pl.pallas_call(
            _k,
            out_shape=jax.ShapeDtypeStruct((16, 128), jnp.float32),
            grid_spec=pltpu.PrefetchScalarGridSpec(
                num_scalar_prefetch=0,
                grid=(2,),
                in_specs=[
                    pl.BlockSpec((8, 128), lambda i: (i, 0)),
                    pl.BlockSpec((8, 128), lambda i: (0, 0),
                                 pipeline_mode=pl.Buffered(1)),
                ],
                out_specs=pl.BlockSpec((8, 128), lambda i: (i, 0)),
            ),
            compiler_params=pltpu.CompilerParams(
                dimension_semantics=("parallel",)),
        )
        r = f(jnp.ones((16, 128), jnp.float32), jnp.ones((8, 128), jnp.float32))
        return bool(jnp.allclose(jax.block_until_ready(r), 2.0))
    except Exception:
        return False


@functools.lru_cache(maxsize=None)
def _vmem_capacity_bytes():
    try:
        return int(pltpu.get_tpu_info().vmem_capacity_bytes)
    except Exception:
        return 64 << 20  # conservative default (v7x per-TensorCore VMEM)


# ---------------------------------------------------------------------------
# Forward wrapper
# ---------------------------------------------------------------------------
@functools.partial(
    jax.jit,
    static_argnames=("block_b", "compute_dtype", "single_buffer_weights"))
def _densenet_forward_impl(x1, w1, b1, w2, b2, *, block_b, compute_dtype,
                           single_buffer_weights):
    x1 = x1.astype(jnp.float32)
    B, d0 = x1.shape
    h1_dim = w1.shape[1]
    d1 = d0 + h1_dim
    h2_dim = w2.shape[1]
    out_dim = d1 + h2_dim
    assert w2.shape[0] == d1

    # Lane-dense output slab: pad the trailing (h2) segment so the padded width
    # is a multiple of 128 lanes. Padded columns see zero weights + zero bias,
    # so they compute hardswish(0) == 0 and are sliced off after the call.
    out_pad = _round_up(out_dim, 128)
    n_pad = out_pad - out_dim
    h2_pad = h2_dim + n_pad

    # ---------------- generation-aware VMEM budget ----------------
    vmem_cap = _vmem_capacity_bytes()
    vmem_limit = max(vmem_cap - (16 << 20), 16 << 20)   # 128MiB->112MiB, 64MiB->48MiB
    ws_cap = max(vmem_limit - (8 << 20), 8 << 20)       # headroom for scratch / sems

    w_itemsize = 4 if compute_dtype is None else jnp.dtype(compute_dtype).itemsize
    wbytes = (d0 * h1_dim + d1 * h2_pad) * w_itemsize + (h1_dim + h2_pad) * 4
    wbuf = 1 if single_buffer_weights else 2

    if wbuf * wbytes > ws_cap:
        # Weights cannot stay resident in VMEM at this mid_dim on this part.
        # TODO(synk): add an output-feature (N) grid axis for dense2 (block w2a as
        # (d0, tn), w2b as (h1_dim, tn), keep h1 in persistent VMEM scratch) so very
        # large mid_dim fits v7x's 64 MiB VMEM instead of this plain-XLA fallback.
        h1 = _hardswish(x1 @ w1 + b1)
        x2 = jnp.concatenate([x1, h1], axis=1)
        h2 = _hardswish(x2 @ w2 + b2)
        return jnp.concatenate([x2, h2], axis=1)

    # Split W2 so the kernel never concatenates activations along the lane axis.
    w2a, w2b = w2[:d0, :], w2[d0:, :]
    if n_pad:
        w2a = jnp.pad(w2a, ((0, 0), (0, n_pad)))
        w2b = jnp.pad(w2b, ((0, 0), (0, n_pad)))
        b2 = jnp.pad(b2, ((0, 0), (0, n_pad)))

    # bf16 MXU operands by default (native MXU dtype on v5e/v6e/v7x); f32
    # accumulation is kept via preferred_element_type; biases / x1 stay f32.
    if compute_dtype is not None:
        w1 = w1.astype(compute_dtype)
        w2a = w2a.astype(compute_dtype)
        w2b = w2b.astype(compute_dtype)

    # Batch tile: big enough to amortize the ~0.35us per-grid-step overhead,
    # small enough that double-buffered f32 activations + resident weights fit.
    def working_set(tb_):
        return 2 * tb_ * (d0 + out_pad) * 4 + wbuf * wbytes

    tb = _round_up(min(block_b, B), 8)
    while tb > 8 and working_set(tb) > ws_cap:
        tb = _round_up(tb // 2, 8)
    if B >= 16:
        # Guarantee >= 2 grid steps so the "parallel" axis can be split across
        # both v7x TensorCores (harmless on single-TC parts).
        tb = max(8, min(tb, _round_up(pl.cdiv(B, 2), 8)))

    # Pad the batch so the grid tiles it exactly (padded rows sliced off below).
    Bp = _round_up(B, tb)
    x1p = jnp.pad(x1, ((0, Bp - B), (0, 0))) if Bp != B else x1

    # Grid-invariant weights/biases: single-buffer them when supported.
    w_kw = {"pipeline_mode": pl.Buffered(1)} if single_buffer_weights else {}

    out = pl.pallas_call(
        densenet_kernel,
        out_shape=jax.ShapeDtypeStruct((Bp, out_pad), jnp.float32),
        grid_spec=pltpu.PrefetchScalarGridSpec(
            num_scalar_prefetch=0,
            grid=(Bp // tb,),
            in_specs=[
                pl.BlockSpec((tb, d0), lambda i: (i, 0)),
                pl.BlockSpec((d0, h1_dim), lambda i: (0, 0), **w_kw),
                pl.BlockSpec((1, h1_dim), lambda i: (0, 0), **w_kw),
                pl.BlockSpec((d0, h2_pad), lambda i: (0, 0), **w_kw),
                pl.BlockSpec((h1_dim, h2_pad), lambda i: (0, 0), **w_kw),
                pl.BlockSpec((1, h2_pad), lambda i: (0, 0), **w_kw),
            ],
            out_specs=pl.BlockSpec((tb, out_pad), lambda i: (i, 0)),
        ),
        compiler_params=pltpu.CompilerParams(
            dimension_semantics=("parallel",),
            vmem_limit_bytes=vmem_limit,
        ),
    )(x1p, w1, b1, w2a, w2b, b2)

    return out[:B, :out_dim]


def densenet_forward(x1, w1, b1, w2, b2, *, block_b=1024,
                     compute_dtype=jnp.bfloat16):
    """DenseNet forward. Weights are (in_dim, out_dim), i.e. transposed vs. PyTorch."""
    return _densenet_forward_impl(
        x1, w1, b1, w2, b2,
        block_b=block_b,
        compute_dtype=compute_dtype,
        single_buffer_weights=_single_buffer_weights_supported(),
    )


# ---------------------------------------------------------------------------
# Parameter init (matches layer_norm(std=1.0, bias_const=1e-6)) and reference
# ---------------------------------------------------------------------------
def _orthogonal(key, shape, gain=1.0, dtype=jnp.float32):
    # Deterministic semi-orthogonal init (like torch.nn.init.orthogonal_).
    rows, cols = shape
    n = max(rows, cols)
    a = jax.random.normal(key, (n, n), dtype=jnp.float32)
    q, r = jnp.linalg.qr(a)
    q = q * jnp.sign(jnp.diag(r))
    return (gain * q[:rows, :cols]).astype(dtype)


def make_params(key, mid_dim):
    assert mid_dim % 8 == 0  # mid_dim / 2**3 % 1 == 0

    def set_dim(i):
        return int((3 / 2) ** i * mid_dim)

    d0, d1 = set_dim(0), set_dim(1)
    k1, k2 = jax.random.split(key)
    # PyTorch Linear weight is (out, in); we store (in, out) so the kernel does x @ W.
    w1_pt = _orthogonal(k1, (d0 // 2, d0), gain=1.0)      # layer_norm std=1.0
    w2_pt = _orthogonal(k2, (d1 // 2, d1), gain=1.0)
    b1 = jnp.full((1, d0 // 2), 1e-6, dtype=jnp.float32)   # bias_const=1e-6
    b2 = jnp.full((1, d1 // 2), 1e-6, dtype=jnp.float32)
    return w1_pt.T, b1, w2_pt.T, b2


def densenet_reference(x1, w1, b1, w2, b2):
    h1 = _hardswish(x1 @ w1 + b1)
    x2 = jnp.concatenate([x1, h1], axis=1)
    h2 = _hardswish(x2 @ w2 + b2)
    return jnp.concatenate([x2, h2], axis=1)


if __name__ == "__main__":
    kx1, kp1, kx2, kp2 = jax.random.split(jax.random.PRNGKey(0), 4)

    # -- Case 1: smallest legal config (mid_dim=32, batch=8). Segment boundaries
    #    are NOT 128-aligned -> register-assembled single-store path; grid == 1.
    mid_dim, batch = 32, 8
    x1 = jax.random.normal(kx1, (batch, mid_dim), dtype=jnp.float32)
    w1, b1, w2, b2 = make_params(kp1, mid_dim)
    ref = densenet_reference(x1, w1, b1, w2, b2)

    out_f32 = jax.block_until_ready(
        densenet_forward(x1, w1, b1, w2, b2, compute_dtype=None))
    assert out_f32.shape == (batch, int((3 / 2) ** 2 * mid_dim))
    assert jnp.allclose(out_f32, ref, atol=1e-5, rtol=1e-5)

    out_bf16 = jax.block_until_ready(densenet_forward(x1, w1, b1, w2, b2))
    assert out_bf16.shape == ref.shape
    assert jnp.allclose(out_bf16, ref, atol=1e-1, rtol=1e-1)  # bf16 operand tolerance

    # -- Case 2: 128-aligned boundaries (mid_dim=256), multi-step grid (>=2 steps
    #    for megacore), batch padding. Exercises the direct slice-store branch.
    mid_dim2, batch2 = 256, 40
    x1b = jax.random.normal(kx2, (batch2, mid_dim2), dtype=jnp.float32)
    w1b, b1b, w2b_, b2b = make_params(kp2, mid_dim2)
    refb = densenet_reference(x1b, w1b, b1b, w2b_, b2b)

    outb_f32 = jax.block_until_ready(
        densenet_forward(x1b, w1b, b1b, w2b_, b2b, block_b=16, compute_dtype=None))
    assert outb_f32.shape == (batch2, int((3 / 2) ** 2 * mid_dim2))
    assert jnp.allclose(outb_f32, refb, atol=1e-4, rtol=1e-4)

    outb_bf16 = jax.block_until_ready(
        densenet_forward(x1b, w1b, b1b, w2b_, b2b, block_b=16))
    assert jnp.allclose(outb_bf16, refb, atol=2e-1, rtol=2e-1)

    print("KERNEL_OK")
</pallas_src>

<mosaic_0001>
module attributes {stable_mosaic.version = 11 : i64} {
  func.func @_k(%arg0: i32, %arg1: memref<8x128xf32, #tpu.memory_space<vmem>>, %arg2: memref<8x128xf32, #tpu.memory_space<vmem>>, %arg3: memref<8x128xf32, #tpu.memory_space<vmem>>) attributes {dimension_semantics = [#tpu.dimension_semantics<parallel>], iteration_bounds = array<i64: 2>, scalar_prefetch = 0 : i64, scratch_operands = 0 : i64, tpu.core_type = #tpu.core_type<tc>, window_params = [{transform_indices = @transform_0, window_bounds = array<i64: 8, 128>}, {pipeline_mode = #tpu.pipeline_mode<synchronous>, transform_indices = @transform_1, window_bounds = array<i64: 8, 128>}, {transform_indices = @transform_2, window_bounds = array<i64: 8, 128>}]} {
    %c0 = arith.constant 0 : index
    %c0_0 = arith.constant 0 : index
    %0 = vector.load %arg1[%c0, %c0_0] : memref<8x128xf32, #tpu.memory_space<vmem>>, vector<8x128xf32>
    %c0_1 = arith.constant 0 : index
    %c0_2 = arith.constant 0 : index
    %1 = vector.load %arg2[%c0_1, %c0_2] : memref<8x128xf32, #tpu.memory_space<vmem>>, vector<8x128xf32>
    %2 = arith.addf %0, %1 : vector<8x128xf32>
    %c0_3 = arith.constant 0 : index
    %c0_4 = arith.constant 0 : index
    %3 = vector.load %arg3[%c0_3, %c0_4] : memref<8x128xf32, #tpu.memory_space<vmem>>, vector<8x128xf32>
    tpu.vector_store %arg3[%c0_3, %c0_4], %2 {strides = array<i32>} : memref<8x128xf32, #tpu.memory_space<vmem>>, vector<8x128xf32>,
    return
  }
  func.func @transform_0(%arg0: i32) -> (i32, i32) {
    %c0_i32 = arith.constant 0 : i32
    %c0_i32_0 = arith.constant 0 : i32
    return %arg0, %c0_i32 : i32, i32
  }
  func.func @transform_1(%arg0: i32) -> (i32, i32) {
    %c0_i32 = arith.constant 0 : i32
    %c0_i32_0 = arith.constant 0 : i32
    %c0_i32_1 = arith.constant 0 : i32
    return %c0_i32, %c0_i32_0 : i32, i32
  }
  func.func @transform_2(%arg0: i32) -> (i32, i32) {
    %c0_i32 = arith.constant 0 : i32
    %c0_i32_0 = arith.constant 0 : i32
    return %arg0, %c0_i32 : i32, i32
  }
}

module attributes {stable_mosaic.version = 11 : i64} {
  func.func @densenet_kernel(%arg0: i32, %arg1: memref<8x32xf32, #tpu.memory_space<vmem>>, %arg2: memref<32x16xf32, #tpu.memory_space<vmem>>, %arg3: memref<1x16xf32, #tpu.memory_space<vmem>>, %arg4: memref<32x80xf32, #tpu.memory_space<vmem>>, %arg5: memref<16x80xf32, #tpu.memory_space<vmem>>, %arg6: memref<1x80xf32, #tpu.memory_space<vmem>>, %arg7: memref<8x128xf32, #tpu.memory_space<vmem>>) attributes {dimension_semantics = [#tpu.dimension_semantics<parallel>], iteration_bounds = array<i64: 1>, scalar_prefetch = 0 : i64, scratch_operands = 0 : i64, tpu.core_type = #tpu.core_type<tc>, window_params = [{transform_indices = @transform_0, window_bounds = array<i64: 8, 32>}, {pipeline_mode = #tpu.pipeline_mode<synchronous>, transform_indices = @transform_1, window_bounds = array<i64: 32, 16>}, {pipeline_mode = #tpu.pipeline_mode<synchronous>, transform_indices = @transform_2, window_bounds = array<i64: 1, 16>}, {pipeline_mode = #tpu.pipeline_mode<synchronous>, transform_indices = @transform_3, window_bounds = array<i64: 32, 80>}, {pipeline_mode = #tpu.pipeline_mode<synchronous>, transform_indices = @transform_4, window_bounds = array<i64: 16, 80>}, {pipeline_mode = #tpu.pipeline_mode<synchronous>, transform_indices = @transform_5, window_bounds = array<i64: 1, 80>}, {transform_indices = @transform_6, window_bounds = array<i64: 8, 128>}]} {
    %c0 = arith.constant 0 : index
    %c0_0 = arith.constant 0 : index
    %0 = vector.load %arg1[%c0, %c0_0] : memref<8x32xf32, #tpu.memory_space<vmem>>, vector<8x32xf32>
    %c0_1 = arith.constant 0 : index
    %c0_2 = arith.constant 0 : index
    %1 = vector.load %arg2[%c0_1, %c0_2] : memref<32x16xf32, #tpu.memory_space<vmem>>, vector<32x16xf32>
    %cst = arith.constant dense<0.000000e+00> : vector<8x16xf32>
    %2 = tpu.matmul %0, %1, %cst {dimension_numbers = #tpu.dot_dimension_numbers<[1], [0], [0], [1], [0, 0, 1, 1], [], []>} : vector<8x32xf32>, vector<32x16xf32>, vector<8x16xf32> -> vector<8x16xf32>
    %c0_3 = arith.constant 0 : index
    %c0_4 = arith.constant 0 : index
    %3 = vector.load %arg3[%c0_3, %c0_4] : memref<1x16xf32, #tpu.memory_space<vmem>>, vector<1x16xf32>
    %4 = vector.broadcast %3 : vector<1x16xf32> to vector<8x16xf32>
    %5 = arith.addf %2, %4 : vector<8x16xf32>
    %cst_5 = arith.constant 3.000000e+00 : f32
    %6 = vector.broadcast %cst_5 : f32 to vector<8x16xf32>
    %7 = arith.addf %5, %6 : vector<8x16xf32>
    %cst_6 = arith.constant 0.000000e+00 : f32
    %cst_7 = arith.constant 6.000000e+00 : f32
    %8 = vector.broadcast %cst_6 : f32 to vector<8x16xf32>
    %9 = arith.maximumf %8, %7 : vector<8x16xf32>
    %10 = vector.broadcast %cst_7 : f32 to vector<8x16xf32>
    %11 = arith.minimumf %10, %9 : vector<8x16xf32>
    %12 = arith.mulf %5, %11 : vector<8x16xf32>
    %cst_8 = arith.constant 0.166666672 : f32
    %13 = vector.broadcast %cst_8 : f32 to vector<8x16xf32>
    %14 = arith.mulf %12, %13 : vector<8x16xf32>
    %c0_9 = arith.constant 0 : index
    %c0_10 = arith.constant 0 : index
    %15 = vector.load %arg4[%c0_9, %c0_10] : memref<32x80xf32, #tpu.memory_space<vmem>>, vector<32x80xf32>
    %cst_11 = arith.constant dense<0.000000e+00> : vector<8x80xf32>
    %16 = tpu.matmul %0, %15, %cst_11 {dimension_numbers = #tpu.dot_dimension_numbers<[1], [0], [0], [1], [0, 0, 1, 1], [], []>} : vector<8x32xf32>, vector<32x80xf32>, vector<8x80xf32> -> vector<8x80xf32>
    %c0_12 = arith.constant 0 : index
    %c0_13 = arith.constant 0 : index
    %17 = vector.load %arg5[%c0_12, %c0_13] : memref<16x80xf32, #tpu.memory_space<vmem>>, vector<16x80xf32>
    %cst_14 = arith.constant dense<0.000000e+00> : vector<8x80xf32>
    %18 = tpu.matmul %14, %17, %cst_14 {dimension_numbers = #tpu.dot_dimension_numbers<[1], [0], [0], [1], [0, 0, 1, 1], [], []>} : vector<8x16xf32>, vector<16x80xf32>, vector<8x80xf32> -> vector<8x80xf32>
    %19 = arith.addf %16, %18 : vector<8x80xf32>
    %c0_15 = arith.constant 0 : index
    %c0_16 = arith.constant 0 : index
    %20 = vector.load %arg6[%c0_15, %c0_16] : memref<1x80xf32, #tpu.memory_space<vmem>>, vector<1x80xf32>
    %21 = vector.broadcast %20 : vector<1x80xf32> to vector<8x80xf32>
    %22 = arith.addf %19, %21 : vector<8x80xf32>
    %cst_17 = arith.constant 3.000000e+00 : f32
    %23 = vector.broadcast %cst_17 : f32 to vector<8x80xf32>
    %24 = arith.addf %22, %23 : vector<8x80xf32>
    %cst_18 = arith.constant 0.000000e+00 : f32
    %cst_19 = arith.constant 6.000000e+00 : f32
    %25 = vector.broadcast %cst_18 : f32 to vector<8x80xf32>
    %26 = arith.maximumf %25, %24 : vector<8x80xf32>
    %27 = vector.broadcast %cst_19 : f32 to vector<8x80xf32>
    %28 = arith.minimumf %27, %26 : vector<8x80xf32>
    %29 = arith.mulf %22, %28 : vector<8x80xf32>
    %cst_20 = arith.constant 0.166666672 : f32
    %30 = vector.broadcast %cst_20 : f32 to vector<8x80xf32>
    %31 = arith.mulf %29, %30 : vector<8x80xf32>
    %32 = tpu.concatenate %0, %14, %31 in 1 : vector<8x32xf32>, vector<8x16xf32>, vector<8x80xf32> -> vector<8x128xf32>
    %c0_21 = arith.constant 0 : index
    %c0_22 = arith.constant 0 : index
    %33 = vector.load %arg7[%c0_21, %c0_22] : memref<8x128xf32, #tpu.memory_space<vmem>>, vector<8x128xf32>
    tpu.vector_store %arg7[%c0_21, %c0_22], %32 {strides = array<i32>} : memref<8x128xf32, #tpu.memory_space<vmem>>, vector<8x128xf32>,
    return
  }
  func.func @transform_0(%arg0: i32) -> (i32, i32) {
    %c0_i32 = arith.constant 0 : i32
    %c0_i32_0 = arith.constant 0 : i32
    return %arg0, %c0_i32 : i32, i32
  }
  func.func @transform_1(%arg0: i32) -> (i32, i32) {
    %c0_i32 = arith.constant 0 : i32
    %c0_i32_0 = arith.constant 0 : i32
    %c0_i32_1 = arith.constant 0 : i32
    return %c0_i32, %c0_i32_0 : i32, i32
  }
  func.func @transform_2(%arg0: i32) -> (i32, i32) {
    %c0_i32 = arith.constant 0 : i32
    %c0_i32_0 = arith.constant 0 : i32
    %c0_i32_1 = arith.constant 0 : i32
    return %c0_i32, %c0_i32_0 : i32, i32
  }
  func.func @transform_3(%arg0: i32) -> (i32, i32) {
    %c0_i32 = arith.constant 0 : i32
    %c0_i32_0 = arith.constant 0 : i32
    %c0_i32_1 = arith.constant 0 : i32
    return %c0_i32, %c0_i32_0 : i32, i32
  }
  func.func @transform_4(%arg0: i32) -> (i32, i32) {
    %c0_i32 = arith.constant 0 : i32
    %c0_i32_0 = arith.constant 0 : i32
    %c0_i32_1 = arith.constant 0 : i32
    return %c0_i32, %c0_i32_0 : i32, i32
  }
  func.func @transform_5(%arg0: i32) -> (i32, i32) {
    %c0_i32 = arith.constant 0 : i32
    %c0_i32_0 = arith.constant 0 : i32
    %c0_i32_1 = arith.constant 0 : i32
    return %c0_i32, %c0_i32_0 : i32, i32
  }
  func.func @transform_6(%arg0: i32) -> (i32, i32) {
    %c0_i32 = arith.constant 0 : i32
    %c0_i32_0 = arith.constant 0 : i32
    return %arg0, %c0_i32 : i32, i32
  }
}

</mosaic_0001>

<bundles_post_ra>
// kernel: tpu_custom_call.1
= control target key start
LH: loop header
LB: loop body
LE: loop exit
PB: predicated region body
PF: predicated region fallthrough
CT: control target
= control target key end

     0   :  { %7 = vsyncpa [#allocation3], 0  ;;  %s633_s0 = inlined_call_operand.hbm [shape: f32[16,128], index: 0, kind: input, shape index: {}]   ;;  %s634_s1 = inlined_call_operand.hbm [shape: f32[8,128], index: 1, kind: input, shape index: {}]   ;;  %s635_s2 = inlined_call_operand.hbm [shape: f32[16,128], index: 2, kind: output, shape index: {}]  }
   0x1   :  { %9 = vsyncpa [#allocation3 + $0x1], 0 }
   0x2   :  { %10 = vsyncpa [#allocation6], 0 }
   0x3   :  { %11 = vsyncpa [#allocation4], 0 }
   0x4   :  { %13 = vsyncpa [#allocation4 + $0x1], 0  ;;  %s495_s9 = smov 0   ;;  %s497_s10 = smov 0  }
   0x5   :  { %s499_s11 = smov 0   ;;  %s501_s12 = smov 0  }
   0x6 LB: > { %s516_s13 = sadd.s32 4294967295, %s477_s12   ;;  %s276_s14 = sadd.s32 4294967294, %s477_s12   ;;  %s477_s12 = sphi %s501_s12, %s645_s12   ;;  %s473_s11 = sphi %s499_s11, %s644_s11   ;;  %s469_s10 = sphi %s497_s10, %s643_s10   ;;  %s465_s9 = sphi %s495_s9, %s642_s9  }
   0x7   : > { %p39_p0 = scmp.ne.s32.totalorder %s469_s10, %s465_s9  ;;  %p40_p1 = scmp.eq.s32.totalorder %s516_s13, 0 }
   0x8   : > { %p84_p2 = scmp.eq.s32.totalorder %s516_s13, 1  ;;  %p90_p3 = scmp.eq.s32.totalorder %s276_s14, 1 }
   0x9   : > { %p525_p4 = por %p40_p1, %p39_p0  ;;  %p277_p5 = scmp.ge.s32.totalorder %s477_s12, 1 }
   0xa   : > { %p530_p6 = por %p90_p3, %p39_p0  ;;  %p97_p7 = scmp.lt.s32.totalorder %s477_s12, 3 }
   0xb   : > { %s109_s19 = sshll.u32 %s634_s1, 4  ;;  %s479_s21 = smov [#allocation5]   ;;  %s110_s19 = int_to_ptr.hbm [resolvable:$true] %s109_s19 }
   0xc   : > { %p538_p8 = pnand %p277_p5, %p97_p7  ;;  %s111_s22 = sshll.u32 %s479_s21, 4  ;;  %s112_s22 = int_to_ptr.vmem [resolvable:$true] %s111_s22 }
   0xd   : > { %s548_s23 = sadd.s32 1, %s477_s12   ;;  %s26_s24 = sadd.s32 1, %s473_s11 }
   0xe   : > { %p298_p10 = pneg %p538_p8  ;;  %s23_s25 = ssub.s32 %s477_s12, %s548_s23 }
   0xf   : > { %p24_p12 = scmp.eq.s32.totalorder %s23_s25, 0  ;;  %p33_p13 = scmp.ne.s32.totalorder %s473_s11, %s469_s10 }
  0x10   : > { %p299_p11 = pnand %p298_p10, %p40_p1  ;;  %p34_p0 = scmp.eq.s32.totalorder %s477_s12, 0 }
  0x11   : > { %s557_s26 = scalar_select %p24_p12, %s473_s11, %s26_s24  }
  0x12   : > { %301 = dma.hbm_to_vmem [thread:$0]  (!%p299_p11), %s110_s19, 128, %s112_s22, [#allocation6]  }
  0x13   : > { %p561_p3 = por %p84_p2, %p33_p13  ;;  %p311_p5 = scmp.lt.s32.totalorder %s477_s12, 2 }
  0x14   : > { %s122_s28 = sand.u32 1, %s473_s11   ;;  %s281_s29 = sshll.u32 %s477_s12, 3 }
  0x15   : > { %p35_p7 = por %p34_p0, %p33_p13  ;;  %s280_s30 = sshll.u32 %s122_s28, 3 }
  0x16   : > { %s130_s5 = scalar_lea.hbm %s633_s0, %s281_s29  ;;  %s126_s7 = scalar_lea.vmem [#allocation2], %s280_s30 }
  0x17   : > { %s132_s6 = sshll.u32 %s130_s5, 4  ;;  %s134_s8 = sshll.u32 %s126_s7, 4  ;;  %s133_s6 = int_to_ptr.hbm [resolvable:$true] %s132_s6  ;;  %s135_s8 = int_to_ptr.vmem [resolvable:$true] %s134_s8 }
  0x18   : > { %p571_p10 = pnand %p311_p5, %p35_p7  ;;  %s123_s17 = scalar_lea.sflag [#allocation3], %s122_s28 }
  0x19   : > { %s377_s18 = sshra.s32 %s133_s6, 4  ;;  %s384_s24 = scalar_lea.hbm %s633_s0, 16  ;;  %s378_s18 = int_to_ptr.hbm [resolvable:$true] %s377_s18 }
  0x1a   : > { %s379_s19 = scalar_lea.hbm %s378_s18, 8  ;;  %p381_p11 = pneg %p571_p10 }
  0x1b   : > { %p380_p2 = scmp.ne.s32.totalorder %s378_s18, %s379_s19  ;;  %p385_p0 = scmp.lt.s32.totalorder %s378_s18, %s633_s0 }
  0x1c   : > { %p386_p5 = scmp.lt.s32.totalorder %s384_s24, %s379_s19 }
  0x1d   : > { %p382_p12 = pnand %p381_p11, %p380_p2 }
  0x1e   : > { %p387_p7 = por %p386_p5, %p385_p0 }
  0x1f   : > { %p383_p13 = pneg %p382_p12 }
  0x21   : > { %p388_p9 = pnand %p387_p7, %p383_p13 }
  0x23   : > { %391 = shalt.err (!%p388_p9)
}
  0x24   : > { %305 = dma.hbm_to_vmem [thread:$0]  (!%p571_p10), %s133_s6, 128, %s135_s8, %s123_s17  }
  0x25   : > { %143 = sbr.rel (%p538_p8) target bundleno = 60 (0x3c), region = 28  ;;  %s588_s28 = sand.u32 (!%p538_p8), 1, %s469_s10  }
  0x26   : > { %s283_s30 = sshll.u32 (!%p538_p8), %s588_s28, 3  ;;  %s146_s3 = scalar_lea.sflag (!%p538_p8), [#allocation3], %s588_s28 }
  0x27   : > { %s149_s4 = scalar_lea.vmem (!%p538_p8), [#allocation2], %s283_s30 }
  0x2a   : > { %452 = dma.done.wait (%p525_p4), %s146_s3, 128  }
  0x2b   : > { %454 = vsyncadd (%p525_p4), %s146_s3, 4294967168 }
  0x2c   : > { %456 = dma.done.wait (%p40_p1), [#allocation6], 128  }
  0x2d   : > { %458 = vsyncadd (%p40_p1), [#allocation6], 4294967168  ;;  %s287_s20 = sshll.u32 %s516_s13, 3  ;;  %s175_s8 = scalar_lea.vmem [#allocation7], %s283_s30  ;;  %v176_v0 = vld [vmem:[%s149_s4] sm:$0xff]  ;;  %v177_v1 = vld [vmem:[#allocation5] sm:$0xff] }
  0x2e   : > { %s191_s7 = scalar_lea.hbm %s635_s2, %s287_s20  ;;  %s193_s14 = sshll.u32 %s175_s8, 4  ;;  %v178_v2 = vadd.f32 %v177_v1, %v176_v0  ;;  %s194_s14 = int_to_ptr.vmem [resolvable:$true] %s193_s14 }
  0x2f   : > { %s195_s17 = sshll.u32 %s191_s7, 4  ;;  %s181_s15 = scalar_lea.sflag [#allocation4], %s588_s28  ;;  %s196_s17 = int_to_ptr.hbm [resolvable:$true] %s195_s17 }
  0x30   : > { %179 = vst [vmem:[%s175_s8] sm:$0xff] %v178_v2  ;;  %s421_s18 = sshra.s32 %s196_s17, 4  ;;  %s427_s22 = scalar_lea.hbm %s635_s2, 16  ;;  %s422_s18 = int_to_ptr.hbm [resolvable:$true] %s421_s18 }
  0x31   : > { %s423_s19 = scalar_lea.hbm %s422_s18, 8  ;;  %p428_p9 = scmp.lt.s32.totalorder %s422_s18, %s635_s2 }
  0x32   : > { %p424_p1 = scmp.ne.s32.totalorder %s422_s18, %s423_s19  ;;  %p429_p10 = scmp.lt.s32.totalorder %s427_s22, %s423_s19 }
  0x34   : > { %p425_p4 = pnand %p424_p1, %p561_p3  ;;  %p430_p2 = por %p429_p10, %p428_p9 }
  0x36   : > { %p426_p8 = pneg %p425_p4 }
  0x38   : > { %p431_p11 = pnand %p430_p2, %p426_p8 }
  0x3a   : > { %434 = shalt.err (!%p431_p11)
}
  0x3b   : > { %296 = dma.vmem_to_hbm [thread:$0]  (%p561_p3), %s194_s14, 128, %s196_s17, %s181_s15  }
  0x3c PF: > { %s207_s29 = sand.u32 1, %s465_s9   ;;  %p641_p12 = scmp.ge.s32.totalorder %s477_s12, 2 }
  0x3d   : > { %s208_s28 = scalar_lea.sflag [#allocation4], %s207_s29 }
  0x3e   : > { %p307_p13 = pnand %p641_p12, %p530_p6 }
  0x40   : > { %p308_p0 = pneg %p307_p13 }
  0x42   : > { %460 = dma.done.wait (%p308_p0), %s208_s28, 128  }
  0x43   : > { %462 = vsyncadd (%p308_p0), %s208_s28, 4294967168  ;;  %p16_p5 = scmp.ge.s32.totalorder %s548_s23, 4   ;;  %s642_s9 = smov %s469_s10 }
  0x44   : > { %s643_s10 = smov %s473_s11  ;;  %s644_s11 = smov %s557_s26 }
  0x45   : > { %s645_s12 = smov %s548_s23  ;;  %18 = sbr.rel (!%p16_p5) target bundleno = 6 (0x6), region = 77 }
  0x4a   :  { %214 = vsyncpa [#allocation3], 1 }
  0x4b   :  { %216 = vsyncpa [#allocation3 + $0x1], 1 }
  0x4c   :  { %217 = vsyncpa [#allocation6], 1 }
  0x4d   :  { %218 = vsyncpa [#allocation4], 1 }
  0x4e   :  { %220 = vsyncpa [#allocation4 + $0x1], 1 }

// kernel: _densenet_forward_impl.1
= control target key start
LH: loop header
LB: loop body
LE: loop exit
PB: predicated region body
PF: predicated region fallthrough
CT: control target
= control target key end

     0   :  { %s266_s0 = inlined_call_operand.vmem [shape: f32[8,32], index: 0, kind: input, shape index: {}]   ;;  %s267_s1 = inlined_call_operand.vmem [shape: f32[32,16], index: 1, kind: input, shape index: {}]   ;;  %s268_s2 = inlined_call_operand.vmem [shape: f32[1,16], index: 2, kind: input, shape index: {}]   ;;  %s269_s3 = inlined_call_operand.vmem [shape: f32[32,80], index: 3, kind: input, shape index: {}]   ;;  %s270_s4 = inlined_call_operand.vmem [shape: f32[16,80], index: 4, kind: input, shape index: {}]   ;;  %s271_s5 = inlined_call_operand.vmem [shape: f32[1,80], index: 5, kind: input, shape index: {}]   ;;  %s272_s6 = inlined_call_operand.hbm [shape: f32[8,128], index: 6, kind: output, shape index: {}]  }
   0x1   :  { %v28_v0 = vld [vmem:[%s267_s1 + $0x18] sm:$0xff]  ;;  %v27_v1 = vld [vmem:[%s267_s1 + $0x10] sm:$0xff]  ;;  %v26_v2 = vld [vmem:[%s267_s1 + $0x8] sm:$0xff] }
   0x2   :  { %49 = vmatpush.msra.mxu0 %v28_v0 }
   0x3   :  { %11 = vsyncpa [#allocation3], 0  ;;  %v25_v3 = vld [vmem:[%s267_s1] sm:$0xff]  ;;  %vm33_vm0 = vcmask 261120   ;;  %v65_v5 = vld [vmem:[%s269_s3 + $0x18] sm:$0xff]  ;;  %vm68_vm1 = vcmask 130048  }
   0x4   :  { %50 = vmatpush.msra.mxu0 %v27_v1  ;;  %v24_v4 = vld [vmem:[%s266_s0] sm:$0xff]  ;;  %104 = vmatpush.msra.mxu2 %v65_v5  ;;  %v64_v6 = vld [vmem:[%s269_s3 + $0x10] sm:$0xff]  ;;  %v63_v7 = vld [vmem:[%s269_s3 + $0x8] sm:$0xff]  ;;  %s185_s20 = smov [#allocation2]   ;;  %s140_s24 = sshll.u32 %s272_s6, 4  ;;  %vm130_vm2 = vcmask 392192   ;;  %s141_s24 = int_to_ptr.hbm [resolvable:$true] %s140_s24 }
   0x5   :  { %v62_v8 = vld [vmem:[%s269_s3] sm:$0xff]  ;;  %v67_v9 = vld [vmem:[%s270_s4 + $0x8] sm:$0xff]  ;;  %s183_s3 = smov 32   ;;  %s138_s21 = sshll.u32 %s185_s20, 4  ;;  %s139_s21 = int_to_ptr.vmem [resolvable:$true] %s138_s21 }
   0x6   :  { %51 = vmatpush.msra.mxu0 %v26_v2  ;;  %105 = vmatpush.msra.mxu2 %v64_v6  ;;  %v66_v10 = vld [vmem:[%s270_s4] sm:$0xff] }
   0x7   :  { %86 = vmatpush.msra.mxu1 %v67_v9  ;;  %v155_v11 = vld [vmem:[%s268_s2] ss:$0 sm:$0xff]  ;;  %s184_s2 = smov 48  }
   0x8   :  { %52 = vmatpush.msra.mxu0 %v25_v3  ;;  %106 = vmatpush.msra.mxu2 %v63_v7  ;;  %v156_v20 = vld [vmem:[%s271_s5] ss:$0 sm:$0xff] }
   0x9   :  { %149 = vmatmul.msk.f32.vlgmr.msra.gmra.mxu0 %vm33_vm0, %v24_v4  ;;  %87 = vmatpush.msra.mxu1 %v66_v10 }
   0xa   :  { %107 = vmatpush.msra.mxu2 %v62_v8 }
   0xb   :  { %151 = vmatmul.msk.f32.vlgmr.msra.gmra.mxu2 %vm33_vm0, %v24_v4 }
  0x86   :  { %v54_v12 = vpop.f32.mrf.mxu0 }
  0x87   :  { %v55_v13 = vadd.f32 %v155_v11, %v54_v12 }
  0x89   :  { %v57_v14 = vadd.f32 3.0, %v55_v13 }
  0x8b   :  { %v58_v15 = vmax.f32 %v57_v14, 0.0 }
  0x8d   :  { %v59_v16 = vmin.f32 %v58_v15, 6.0 }
  0x8e   :  { %v109_v19 = vpop.f32.mrf.mxu2 }
  0x8f   :  { %v60_v17 = vmul.f32 %v59_v16, %v55_v13 }
  0x91   :  { %v61_v18 = vmul.f32 0.16666667, %v60_v17 }
  0x93   :  { %122 = vrot.lane.b32.xlu0 %v61_v18, %s183_s3  ;;  %150 = vmatmul.msk.f32.vlgmr.msra.gmra.mxu1 %vm68_vm1, %v61_v18 }
 0x105   :  { %v123_v29 = vpop.permute.xlu0 %122 }
 0x106   :  { %v129_v30 = vsel %vm33_vm0, %v24_v4, %v123_v29 }
 0x110   :  { %v89_v21 = vpop.f32.mrf.mxu1 }
 0x111   :  { %v110_v22 = vadd.f32 %v109_v19, %v89_v21 }
 0x113   :  { %v116_v23 = vadd.f32 %v156_v20, %v110_v22 }
 0x115   :  { %v117_v24 = vadd.f32 3.0, %v116_v23 }
 0x117   :  { %v118_v25 = vmax.f32 %v117_v24, 0.0 }
 0x119   :  { %v119_v26 = vmin.f32 %v118_v25, 6.0 }
 0x11b   :  { %v120_v27 = vmul.f32 %v119_v26, %v116_v23 }
 0x11d   :  { %v121_v28 = vmul.f32 0.16666667, %v120_v27 }
 0x11f   :  { %126 = vrot.lane.b32.xlu0 %v121_v28, %s184_s2 }
 0x191   :  { %v127_v31 = vpop.permute.xlu0 %126 }
 0x192   :  { %v131_v32 = vsel %vm130_vm2, %v129_v30, %v127_v31 }
 0x193   :  { %132 = vst [vmem:[#allocation2] sm:$0xff] %v131_v32 }
 0x194   :  { %143 = dma.vmem_to_hbm [thread:$0]  %s139_s21, 128, %s141_s24, [#allocation3]  }
 0x195   :  { %181 = dma.done.wait [#allocation3], 128  }
 0x196   :  { %182 = vsyncadd [#allocation3], 4294967168 }
 0x197   :  { %148 = vsyncpa [#allocation3], 1 }

</bundles_post_ra>
